<compile_context>
chip_gen: v6e
topology: v6e:2x2x1
jax: 0.10.0
libtpu: 0.0.40
codegen_flags: <defaults>
</compile_context>

<pallas_src>
import functools
import math

import jax
import jax.numpy as jnp
from jax import lax
from jax.experimental import pallas as pl
from jax.experimental.pallas import tpu as pltpu


# Layer hyper-parameters straight from the PyTorch module.
_LAYER_CFGS = (
    dict(k=4, dilation=2, stride=2, pad=1, bn=True),
    dict(k=4, dilation=2, stride=2, pad=1, bn=True),
    dict(k=6, dilation=2, stride=4, pad=1, bn=True),
    dict(k=6, dilation=2, stride=4, pad=1, bn=True),
    dict(k=4, dilation=2, stride=2, pad=1, bn=False),
)
_BN_EPS = 1e-5


def _deconv_kernel(x_ref, w_ref, o_ref, *, K, D, TH, W_out, C_in, C_out):
    """One transposed-conv layer, output rows [t*TH, (t+1)*TH).

    x_ref: (1, H_pad, W_pad, C_in)   zero-upsampled + padded image (whole image)
    w_ref: (K*K*C_in + 2, C_out)     flipped taps stacked + [scale row, shift row]
    o_ref: (1, TH, W_out, C_out)
    """
    t = pl.program_id(1)
    oh0 = t * TH

    scale = w_ref[pl.ds(K * K * C_in, 1), :]      # (1, C_out) folded BN scale
    shift = w_ref[pl.ds(K * K * C_in + 1, 1), :]  # (1, C_out) folded BN shift / bias

    def row_body(i, carry):
        acc = jnp.zeros((W_out, C_out), jnp.float32)
        for kh in range(K):
            row = oh0 + i + kh * D
            for kw in range(K):
                xs = x_ref[0, row, pl.ds(kw * D, W_out), :]            # (W_out, C_in)
                w_tap = w_ref[pl.ds((kh * K + kw) * C_in, C_in), :]    # (C_in, C_out)
                acc = acc + jnp.dot(xs, w_tap,
                                    preferred_element_type=jnp.float32)
        o_ref[0, i, :, :] = (acc * scale + shift).astype(o_ref.dtype)
        return carry

    lax.fori_loop(0, TH, row_body, None)


def _pick_row_tile(h_out, w_out, c_out, budget_bytes=2 << 20):
    """Largest divisor of h_out whose output row-block stays under budget."""
    row_bytes = max(1, w_out * c_out * 4)
    cap = max(1, budget_bytes // row_bytes)
    th = 1
    for cand in range(1, h_out + 1):
        if h_out % cand == 0 and cand <= cap:
            th = cand
    if th < 8 and h_out * row_bytes <= (8 << 20):
        th = h_out  # prime-ish h_out: one whole-image tile is still small
    return th


def _deconv2d_pallas(x_nhwc, w_t, scale, shift, *, stride, pad, dilation):
    """PyTorch-style ConvTranspose2d + folded per-channel affine, NHWC."""
    N, H_in, W_in, C_in = x_nhwc.shape
    C_out, K = w_t.shape[1], w_t.shape[2]
    s, p, d = stride, pad, dilation
    pad_eq = d * (K - 1) - p
    assert pad_eq >= 0, "padding larger than dilated kernel is unsupported"

    H_out = (H_in - 1) * s - 2 * p + d * (K - 1) + 1
    W_out = (W_in - 1) * s - 2 * p + d * (K - 1) + 1
    H_pad = (H_in - 1) * s + 1 + 2 * pad_eq
    W_pad = (W_in - 1) * s + 1 + 2 * pad_eq

    # Zero-upsample by `stride` (interior padding) and pad edges: one lax.pad.
    zero = jnp.zeros((), x_nhwc.dtype)
    x_pad = lax.pad(
        x_nhwc, zero,
        ((0, 0, 0), (pad_eq, pad_eq, s - 1), (pad_eq, pad_eq, s - 1), (0, 0, 0)))

    # Pack all layer parameters into a single slab:
    #   rows [(kh*K+kw)*C_in : +C_in] = flipped tap W_t[:, :, K-1-kh, K-1-kw]
    #   row  K*K*C_in     = scale
    #   row  K*K*C_in + 1 = shift
    w_flip = w_t[:, :, ::-1, ::-1]                              # (C_in, C_out, K, K)
    taps = jnp.transpose(w_flip, (2, 3, 0, 1)).reshape(K * K * C_in, C_out)
    slab = jnp.concatenate(
        [taps, scale[None, :], shift[None, :]], axis=0).astype(jnp.float32)

    TH = _pick_row_tile(H_out, W_out, C_out)
    grid = (N, H_out // TH)

    kernel = functools.partial(
        _deconv_kernel, K=K, D=d, TH=TH, W_out=W_out, C_in=C_in, C_out=C_out)

    return pl.pallas_call(
        kernel,
        out_shape=jax.ShapeDtypeStruct((N, H_out, W_out, C_out), jnp.float32),
        grid=grid,
        in_specs=[
            # Whole padded image of one batch element; the block index ignores
            # the row-tile axis so it stays resident across row tiles.
            pl.BlockSpec((1, H_pad, W_pad, C_in), lambda n, t: (n, 0, 0, 0)),
            # Single packed parameter slab (weights + folded BN): one DMA.
            pl.BlockSpec(slab.shape, lambda n, t: (0, 0)),
        ],
        out_specs=pl.BlockSpec((1, TH, W_out, C_out), lambda n, t: (n, t, 0, 0)),
        compiler_params=pltpu.CompilerParams(
            dimension_semantics=("parallel", "arbitrary"),
            vmem_limit_bytes=32 * 1024 * 1024),
    )(x_pad, slab)


def _fold_affine(layer):
    c_out = layer["w"].shape[1]
    if layer["bn"] is not None:
        gamma, beta, mean, var = layer["bn"]
        scale = gamma * lax.rsqrt(var + _BN_EPS)
        shift = beta - mean * scale
    else:
        scale = jnp.ones((c_out,), jnp.float32)
        shift = layer["bias"]
    return scale, shift


def decoder_category_forward(embedded_nchw, params):
    """Pallas forward: (B, conv_dim*8, H, W) NCHW -> (B, img_dim, H', W') NCHW."""
    x = jnp.transpose(embedded_nchw.astype(jnp.float32), (0, 2, 3, 1))  # NHWC
    for layer in params:
        scale, shift = _fold_affine(layer)
        x = _deconv2d_pallas(x, layer["w"], scale, shift,
                             stride=layer["stride"], pad=layer["pad"],
                             dilation=layer["dilation"])
    return jnp.transpose(x, (0, 3, 1, 2))  # back to NCHW, like PyTorch


# ----------------------------------------------------------------------------
# Plain-JAX reference mirroring the PyTorch semantics (independent path).
# ----------------------------------------------------------------------------
def _ref_conv_transpose(x_nchw, w_t, *, stride, pad, dilation):
    K = w_t.shape[2]
    pad_eq = dilation * (K - 1) - pad
    w_conv = jnp.transpose(w_t[:, :, ::-1, ::-1], (1, 0, 2, 3))  # OIHW, flipped
    return lax.conv_general_dilated(
        x_nchw, w_conv, window_strides=(1, 1),
        padding=((pad_eq, pad_eq), (pad_eq, pad_eq)),
        lhs_dilation=(stride, stride), rhs_dilation=(dilation, dilation),
        dimension_numbers=("NCHW", "OIHW", "NCHW"),
        precision=lax.Precision.HIGHEST)


def reference_forward(embedded_nchw, params):
    y = embedded_nchw.astype(jnp.float32)
    for layer in params:
        y = _ref_conv_transpose(y, layer["w"], stride=layer["stride"],
                                pad=layer["pad"], dilation=layer["dilation"])
        scale, shift = _fold_affine(layer)
        y = y * scale[None, :, None, None] + shift[None, :, None, None]
    return y


def init_params(key, conv_dim=4, img_dim=4):
    """Deterministic init. Weights stored like PyTorch ConvTranspose2d: (C_in, C_out, K, K)."""
    cd = conv_dim
    channels = [(cd * 8, cd * 8), (cd * 8, cd * 4), (cd * 4, cd * 2),
                (cd * 2, cd * 1), (cd * 1, img_dim)]
    params = []
    for (c_in, c_out), cfg in zip(channels, _LAYER_CFGS):
        key, kw, kg, kb, km, kv, kbias = jax.random.split(key, 7)
        k = cfg["k"]
        bound = 1.0 / math.sqrt(c_in * k * k)
        w = jax.random.uniform(kw, (c_in, c_out, k, k), jnp.float32, -bound, bound)
        if cfg["bn"]:
            bn = (jax.random.uniform(kg, (c_out,), jnp.float32, 0.5, 1.5),   # gamma
                  0.1 * jax.random.normal(kb, (c_out,), jnp.float32),        # beta
                  0.1 * jax.random.normal(km, (c_out,), jnp.float32),        # running_mean
                  jax.random.uniform(kv, (c_out,), jnp.float32, 0.5, 1.5))   # running_var
            bias = None
        else:
            bn = None
            bias = 0.1 * jax.random.normal(kbias, (c_out,), jnp.float32)
        params.append(dict(w=w, bn=bn, bias=bias, stride=cfg["stride"],
                           pad=cfg["pad"], dilation=cfg["dilation"]))
    return params


if __name__ == "__main__":
    key = jax.random.PRNGKey(0)
    k_in, k_par = jax.random.split(key)

    # Small shapes consistent with the module: conv_dim=4 -> 32 input channels,
    # img_dim=4 output channels, 1x1 latent grid, batch 2.
    B, conv_dim, img_dim, H0, W0 = 2, 4, 4, 1, 1
    embedded = jax.random.normal(k_in, (B, conv_dim * 8, H0, W0), jnp.float32)
    params = init_params(k_par, conv_dim=conv_dim, img_dim=img_dim)

    out = jax.block_until_ready(decoder_category_forward(embedded, params))
    ref = jax.block_until_ready(reference_forward(embedded, params))

    assert out.shape == ref.shape, (out.shape, ref.shape)
    assert out.shape[:2] == (B, img_dim), out.shape
    max_err = float(jnp.max(jnp.abs(out - ref)))
    assert jnp.allclose(out, ref, atol=1e-2, rtol=1e-2), max_err
    print("KERNEL_OK")
</pallas_src>

<mosaic_0001>
module attributes {stable_mosaic.version = 11 : i64} {
  func.func @_deconv_kernel(%arg0: i32, %arg1: i32, %arg2: memref<1x11x11x32xf32, #tpu.memory_space<vmem>>, %arg3: memref<514x32xf32, #tpu.memory_space<vmem>>, %arg4: memref<1x5x5x32xf32, #tpu.memory_space<vmem>>) attributes {dimension_semantics = [#tpu.dimension_semantics<parallel>, #tpu.dimension_semantics<arbitrary>], iteration_bounds = array<i64: 2, 1>, scalar_prefetch = 0 : i64, scratch_operands = 0 : i64, tpu.core_type = #tpu.core_type<tc>, window_params = [{transform_indices = @transform_0, window_bounds = array<i64: 1, 11, 11, 32>}, {pipeline_mode = #tpu.pipeline_mode<synchronous>, transform_indices = @transform_1, window_bounds = array<i64: 514, 32>}, {transform_indices = @transform_2, window_bounds = array<i64: 1, 5, 5, 32>}]} {
    %c5_i32 = arith.constant 5 : i32
    %0 = arith.muli %arg1, %c5_i32 : i32
    %c512 = arith.constant 512 : index
    %c0 = arith.constant 0 : index
    %1 = vector.load %arg3[%c512, %c0] : memref<514x32xf32, #tpu.memory_space<vmem>>, vector<1x32xf32>
    %c513 = arith.constant 513 : index
    %c0_0 = arith.constant 0 : index
    %2 = vector.load %arg3[%c513, %c0_0] : memref<514x32xf32, #tpu.memory_space<vmem>>, vector<1x32xf32>
    %c0_i32 = arith.constant 0 : i32
    %c5_i32_1 = arith.constant 5 : i32
    %3 = arith.addi %c0_i32, %c5_i32_1 : i32
    %c1_i32 = arith.constant 1 : i32
    scf.for %arg5 = %c0_i32 to %3 step %c1_i32  : i32 {
      %cst = arith.constant 0.000000e+00 : f32
      %4 = vector.broadcast %cst : f32 to vector<5x32xf32>
      %5 = arith.addi %0, %arg5 : i32
      %c0_i32_3 = arith.constant 0 : i32
      %6 = arith.addi %5, %c0_i32_3 : i32
      %c0_4 = arith.constant 0 : index
      %7 = arith.index_cast %6 : i32 to index
      %c0_5 = arith.constant 0 : index
      %c0_6 = arith.constant 0 : index
      %8 = vector.load %arg2[%c0_4, %7, %c0_5, %c0_6] : memref<1x11x11x32xf32, #tpu.memory_space<vmem>>, vector<1x1x5x32xf32>
      %9 = vector.shape_cast %8 : vector<1x1x5x32xf32> to vector<5x32xf32>
      %c0_7 = arith.constant 0 : index
      %c0_8 = arith.constant 0 : index
      %10 = vector.load %arg3[%c0_7, %c0_8] : memref<514x32xf32, #tpu.memory_space<vmem>>, vector<32x32xf32>
      %cst_9 = arith.constant dense<0.000000e+00> : vector<5x32xf32>
      %11 = tpu.matmul %9, %10, %cst_9 {dimension_numbers = #tpu.dot_dimension_numbers<[1], [0], [0], [1], [0, 0, 1, 1], [], []>} : vector<5x32xf32>, vector<32x32xf32>, vector<5x32xf32> -> vector<5x32xf32>
      %12 = arith.addf %4, %11 : vector<5x32xf32>
      %c0_10 = arith.constant 0 : index
      %13 = arith.index_cast %6 : i32 to index
      %c2 = arith.constant 2 : index
      %c0_11 = arith.constant 0 : index
      %14 = vector.load %arg2[%c0_10, %13, %c2, %c0_11] : memref<1x11x11x32xf32, #tpu.memory_space<vmem>>, vector<1x1x5x32xf32>
      %15 = vector.shape_cast %14 : vector<1x1x5x32xf32> to vector<5x32xf32>
      %c32 = arith.constant 32 : index
      %c0_12 = arith.constant 0 : index
      %16 = vector.load %arg3[%c32, %c0_12] : memref<514x32xf32, #tpu.memory_space<vmem>>, vector<32x32xf32>
      %cst_13 = arith.constant dense<0.000000e+00> : vector<5x32xf32>
      %17 = tpu.matmul %15, %16, %cst_13 {dimension_numbers = #tpu.dot_dimension_numbers<[1], [0], [0], [1], [0, 0, 1, 1], [], []>} : vector<5x32xf32>, vector<32x32xf32>, vector<5x32xf32> -> vector<5x32xf32>
      %18 = arith.addf %12, %17 : vector<5x32xf32>
      %c0_14 = arith.constant 0 : index
      %19 = arith.index_cast %6 : i32 to index
      %c4 = arith.constant 4 : index
      %c0_15 = arith.constant 0 : index
      %20 = vector.load %arg2[%c0_14, %19, %c4, %c0_15] : memref<1x11x11x32xf32, #tpu.memory_space<vmem>>, vector<1x1x5x32xf32>
      %21 = vector.shape_cast %20 : vector<1x1x5x32xf32> to vector<5x32xf32>
      %c64 = arith.constant 64 : index
      %c0_16 = arith.constant 0 : index
      %22 = vector.load %arg3[%c64, %c0_16] : memref<514x32xf32, #tpu.memory_space<vmem>>, vector<32x32xf32>
      %cst_17 = arith.constant dense<0.000000e+00> : vector<5x32xf32>
      %23 = tpu.matmul %21, %22, %cst_17 {dimension_numbers = #tpu.dot_dimension_numbers<[1], [0], [0], [1], [0, 0, 1, 1], [], []>} : vector<5x32xf32>, vector<32x32xf32>, vector<5x32xf32> -> vector<5x32xf32>
      %24 = arith.addf %18, %23 : vector<5x32xf32>
      %c0_18 = arith.constant 0 : index
      %25 = arith.index_cast %6 : i32 to index
      %c6 = arith.constant 6 : index
      %c0_19 = arith.constant 0 : index
      %26 = vector.load %arg2[%c0_18, %25, %c6, %c0_19] : memref<1x11x11x32xf32, #tpu.memory_space<vmem>>, vector<1x1x5x32xf32>
      %27 = vector.shape_cast %26 : vector<1x1x5x32xf32> to vector<5x32xf32>
      %c96 = arith.constant 96 : index
      %c0_20 = arith.constant 0 : index
      %28 = vector.load %arg3[%c96, %c0_20] : memref<514x32xf32, #tpu.memory_space<vmem>>, vector<32x32xf32>
      %cst_21 = arith.constant dense<0.000000e+00> : vector<5x32xf32>
      %29 = tpu.matmul %27, %28, %cst_21 {dimension_numbers = #tpu.dot_dimension_numbers<[1], [0], [0], [1], [0, 0, 1, 1], [], []>} : vector<5x32xf32>, vector<32x32xf32>, vector<5x32xf32> -> vector<5x32xf32>
      %30 = arith.addf %24, %29 : vector<5x32xf32>
      %31 = arith.addi %0, %arg5 : i32
      %c2_i32 = arith.constant 2 : i32
      %32 = arith.addi %31, %c2_i32 : i32
      %c0_22 = arith.constant 0 : index
      %33 = arith.index_cast %32 : i32 to index
      %c0_23 = arith.constant 0 : index
      %c0_24 = arith.constant 0 : index
      %34 = vector.load %arg2[%c0_22, %33, %c0_23, %c0_24] : memref<1x11x11x32xf32, #tpu.memory_space<vmem>>, vector<1x1x5x32xf32>
      %35 = vector.shape_cast %34 : vector<1x1x5x32xf32> to vector<5x32xf32>
      %c128 = arith.constant 128 : index
      %c0_25 = arith.constant 0 : index
      %36 = vector.load %arg3[%c128, %c0_25] : memref<514x32xf32, #tpu.memory_space<vmem>>, vector<32x32xf32>
      %cst_26 = arith.constant dense<0.000000e+00> : vector<5x32xf32>
      %37 = tpu.matmul %35, %36, %cst_26 {dimension_numbers = #tpu.dot_dimension_numbers<[1], [0], [0], [1], [0, 0, 1, 1], [], []>} : vector<5x32xf32>, vector<32x32xf32>, vector<5x32xf32> -> vector<5x32xf32>
      %38 = arith.addf %30, %37 : vector<5x32xf32>
      %c0_27 = arith.constant 0 : index
      %39 = arith.index_cast %32 : i32 to index
      %c2_28 = arith.constant 2 : index
      %c0_29 = arith.constant 0 : index
      %40 = vector.load %arg2[%c0_27, %39, %c2_28, %c0_29] : memref<1x11x11x32xf32, #tpu.memory_space<vmem>>, vector<1x1x5x32xf32>
      %41 = vector.shape_cast %40 : vector<1x1x5x32xf32> to vector<5x32xf32>
      %c160 = arith.constant 160 : index
      %c0_30 = arith.constant 0 : index
      %42 = vector.load %arg3[%c160, %c0_30] : memref<514x32xf32, #tpu.memory_space<vmem>>, vector<32x32xf32>
      %cst_31 = arith.constant dense<0.000000e+00> : vector<5x32xf32>
      %43 = tpu.matmul %41, %42, %cst_31 {dimension_numbers = #tpu.dot_dimension_numbers<[1], [0], [0], [1], [0, 0, 1, 1], [], []>} : vector<5x32xf32>, vector<32x32xf32>, vector<5x32xf32> -> vector<5x32xf32>
      %44 = arith.addf %38, %43 : vector<5x32xf32>
      %c0_32 = arith.constant 0 : index
      %45 = arith.index_cast %32 : i32 to index
      %c4_33 = arith.constant 4 : index
      %c0_34 = arith.constant 0 : index
      %46 = vector.load %arg2[%c0_32, %45, %c4_33, %c0_34] : memref<1x11x11x32xf32, #tpu.memory_space<vmem>>, vector<1x1x5x32xf32>
      %47 = vector.shape_cast %46 : vector<1x1x5x32xf32> to vector<5x32xf32>
      %c192 = arith.constant 192 : index
      %c0_35 = arith.constant 0 : index
      %48 = vector.load %arg3[%c192, %c0_35] : memref<514x32xf32, #tpu.memory_space<vmem>>, vector<32x32xf32>
      %cst_36 = arith.constant dense<0.000000e+00> : vector<5x32xf32>
      %49 = tpu.matmul %47, %48, %cst_36 {dimension_numbers = #tpu.dot_dimension_numbers<[1], [0], [0], [1], [0, 0, 1, 1], [], []>} : vector<5x32xf32>, vector<32x32xf32>, vector<5x32xf32> -> vector<5x32xf32>
      %50 = arith.addf %44, %49 : vector<5x32xf32>
      %c0_37 = arith.constant 0 : index
      %51 = arith.index_cast %32 : i32 to index
      %c6_38 = arith.constant 6 : index
      %c0_39 = arith.constant 0 : index
      %52 = vector.load %arg2[%c0_37, %51, %c6_38, %c0_39] : memref<1x11x11x32xf32, #tpu.memory_space<vmem>>, vector<1x1x5x32xf32>
      %53 = vector.shape_cast %52 : vector<1x1x5x32xf32> to vector<5x32xf32>
      %c224 = arith.constant 224 : index
      %c0_40 = arith.constant 0 : index
      %54 = vector.load %arg3[%c224, %c0_40] : memref<514x32xf32, #tpu.memory_space<vmem>>, vector<32x32xf32>
      %cst_41 = arith.constant dense<0.000000e+00> : vector<5x32xf32>
      %55 = tpu.matmul %53, %54, %cst_41 {dimension_numbers = #tpu.dot_dimension_numbers<[1], [0], [0], [1], [0, 0, 1, 1], [], []>} : vector<5x32xf32>, vector<32x32xf32>, vector<5x32xf32> -> vector<5x32xf32>
      %56 = arith.addf %50, %55 : vector<5x32xf32>
      %57 = arith.addi %0, %arg5 : i32
      %c4_i32 = arith.constant 4 : i32
      %58 = arith.addi %57, %c4_i32 : i32
      %c0_42 = arith.constant 0 : index
      %59 = arith.index_cast %58 : i32 to index
      %c0_43 = arith.constant 0 : index
      %c0_44 = arith.constant 0 : index
      %60 = vector.load %arg2[%c0_42, %59, %c0_43, %c0_44] : memref<1x11x11x32xf32, #tpu.memory_space<vmem>>, vector<1x1x5x32xf32>
      %61 = vector.shape_cast %60 : vector<1x1x5x32xf32> to vector<5x32xf32>
      %c256 = arith.constant 256 : index
      %c0_45 = arith.constant 0 : index
      %62 = vector.load %arg3[%c256, %c0_45] : memref<514x32xf32, #tpu.memory_space<vmem>>, vector<32x32xf32>
      %cst_46 = arith.constant dense<0.000000e+00> : vector<5x32xf32>
      %63 = tpu.matmul %61, %62, %cst_46 {dimension_numbers = #tpu.dot_dimension_numbers<[1], [0], [0], [1], [0, 0, 1, 1], [], []>} : vector<5x32xf32>, vector<32x32xf32>, vector<5x32xf32> -> vector<5x32xf32>
      %64 = arith.addf %56, %63 : vector<5x32xf32>
      %c0_47 = arith.constant 0 : index
      %65 = arith.index_cast %58 : i32 to index
      %c2_48 = arith.constant 2 : index
      %c0_49 = arith.constant 0 : index
      %66 = vector.load %arg2[%c0_47, %65, %c2_48, %c0_49] : memref<1x11x11x32xf32, #tpu.memory_space<vmem>>, vector<1x1x5x32xf32>
      %67 = vector.shape_cast %66 : vector<1x1x5x32xf32> to vector<5x32xf32>
      %c288 = arith.constant 288 : index
      %c0_50 = arith.constant 0 : index
      %68 = vector.load %arg3[%c288, %c0_50] : memref<514x32xf32, #tpu.memory_space<vmem>>, vector<32x32xf32>
      %cst_51 = arith.constant dense<0.000000e+00> : vector<5x32xf32>
      %69 = tpu.matmul %67, %68, %cst_51 {dimension_numbers = #tpu.dot_dimension_numbers<[1], [0], [0], [1], [0, 0, 1, 1], [], []>} : vector<5x32xf32>, vector<32x32xf32>, vector<5x32xf32> -> vector<5x32xf32>
      %70 = arith.addf %64, %69 : vector<5x32xf32>
      %c0_52 = arith.constant 0 : index
      %71 = arith.index_cast %58 : i32 to index
      %c4_53 = arith.constant 4 : index
      %c0_54 = arith.constant 0 : index
      %72 = vector.load %arg2[%c0_52, %71, %c4_53, %c0_54] : memref<1x11x11x32xf32, #tpu.memory_space<vmem>>, vector<1x1x5x32xf32>
      %73 = vector.shape_cast %72 : vector<1x1x5x32xf32> to vector<5x32xf32>
      %c320 = arith.constant 320 : index
      %c0_55 = arith.constant 0 : index
      %74 = vector.load %arg3[%c320, %c0_55] : memref<514x32xf32, #tpu.memory_space<vmem>>, vector<32x32xf32>
      %cst_56 = arith.constant dense<0.000000e+00> : vector<5x32xf32>
      %75 = tpu.matmul %73, %74, %cst_56 {dimension_numbers = #tpu.dot_dimension_numbers<[1], [0], [0], [1], [0, 0, 1, 1], [], []>} : vector<5x32xf32>, vector<32x32xf32>, vector<5x32xf32> -> vector<5x32xf32>
      %76 = arith.addf %70, %75 : vector<5x32xf32>
      %c0_57 = arith.constant 0 : index
      %77 = arith.index_cast %58 : i32 to index
      %c6_58 = arith.constant 6 : index
      %c0_59 = arith.constant 0 : index
      %78 = vector.load %arg2[%c0_57, %77, %c6_58, %c0_59] : memref<1x11x11x32xf32, #tpu.memory_space<vmem>>, vector<1x1x5x32xf32>
      %79 = vector.shape_cast %78 : vector<1x1x5x32xf32> to vector<5x32xf32>
      %c352 = arith.constant 352 : index
      %c0_60 = arith.constant 0 : index
      %80 = vector.load %arg3[%c352, %c0_60] : memref<514x32xf32, #tpu.memory_space<vmem>>, vector<32x32xf32>
      %cst_61 = arith.constant dense<0.000000e+00> : vector<5x32xf32>
      %81 = tpu.matmul %79, %80, %cst_61 {dimension_numbers = #tpu.dot_dimension_numbers<[1], [0], [0], [1], [0, 0, 1, 1], [], []>} : vector<5x32xf32>, vector<32x32xf32>, vector<5x32xf32> -> vector<5x32xf32>
      %82 = arith.addf %76, %81 : vector<5x32xf32>
      %83 = arith.addi %0, %arg5 : i32
      %c6_i32 = arith.constant 6 : i32
      %84 = arith.addi %83, %c6_i32 : i32
      %c0_62 = arith.constant 0 : index
      %85 = arith.index_cast %84 : i32 to index
      %c0_63 = arith.constant 0 : index
      %c0_64 = arith.constant 0 : index
      %86 = vector.load %arg2[%c0_62, %85, %c0_63, %c0_64] : memref<1x11x11x32xf32, #tpu.memory_space<vmem>>, vector<1x1x5x32xf32>
      %87 = vector.shape_cast %86 : vector<1x1x5x32xf32> to vector<5x32xf32>
      %c384 = arith.constant 384 : index
      %c0_65 = arith.constant 0 : index
      %88 = vector.load %arg3[%c384, %c0_65] : memref<514x32xf32, #tpu.memory_space<vmem>>, vector<32x32xf32>
      %cst_66 = arith.constant dense<0.000000e+00> : vector<5x32xf32>
      %89 = tpu.matmul %87, %88, %cst_66 {dimension_numbers = #tpu.dot_dimension_numbers<[1], [0], [0], [1], [0, 0, 1, 1], [], []>} : vector<5x32xf32>, vector<32x32xf32>, vector<5x32xf32> -> vector<5x32xf32>
      %90 = arith.addf %82, %89 : vector<5x32xf32>
      %c0_67 = arith.constant 0 : index
      %91 = arith.index_cast %84 : i32 to index
      %c2_68 = arith.constant 2 : index
      %c0_69 = arith.constant 0 : index
      %92 = vector.load %arg2[%c0_67, %91, %c2_68, %c0_69] : memref<1x11x11x32xf32, #tpu.memory_space<vmem>>, vector<1x1x5x32xf32>
      %93 = vector.shape_cast %92 : vector<1x1x5x32xf32> to vector<5x32xf32>
      %c416 = arith.constant 416 : index
      %c0_70 = arith.constant 0 : index
      %94 = vector.load %arg3[%c416, %c0_70] : memref<514x32xf32, #tpu.memory_space<vmem>>, vector<32x32xf32>
      %cst_71 = arith.constant dense<0.000000e+00> : vector<5x32xf32>
      %95 = tpu.matmul %93, %94, %cst_71 {dimension_numbers = #tpu.dot_dimension_numbers<[1], [0], [0], [1], [0, 0, 1, 1], [], []>} : vector<5x32xf32>, vector<32x32xf32>, vector<5x32xf32> -> vector<5x32xf32>
      %96 = arith.addf %90, %95 : vector<5x32xf32>
      %c0_72 = arith.constant 0 : index
      %97 = arith.index_cast %84 : i32 to index
      %c4_73 = arith.constant 4 : index
      %c0_74 = arith.constant 0 : index
      %98 = vector.load %arg2[%c0_72, %97, %c4_73, %c0_74] : memref<1x11x11x32xf32, #tpu.memory_space<vmem>>, vector<1x1x5x32xf32>
      %99 = vector.shape_cast %98 : vector<1x1x5x32xf32> to vector<5x32xf32>
      %c448 = arith.constant 448 : index
      %c0_75 = arith.constant 0 : index
      %100 = vector.load %arg3[%c448, %c0_75] : memref<514x32xf32, #tpu.memory_space<vmem>>, vector<32x32xf32>
      %cst_76 = arith.constant dense<0.000000e+00> : vector<5x32xf32>
      %101 = tpu.matmul %99, %100, %cst_76 {dimension_numbers = #tpu.dot_dimension_numbers<[1], [0], [0], [1], [0, 0, 1, 1], [], []>} : vector<5x32xf32>, vector<32x32xf32>, vector<5x32xf32> -> vector<5x32xf32>
      %102 = arith.addf %96, %101 : vector<5x32xf32>
      %c0_77 = arith.constant 0 : index
      %103 = arith.index_cast %84 : i32 to index
      %c6_78 = arith.constant 6 : index
      %c0_79 = arith.constant 0 : index
      %104 = vector.load %arg2[%c0_77, %103, %c6_78, %c0_79] : memref<1x11x11x32xf32, #tpu.memory_space<vmem>>, vector<1x1x5x32xf32>
      %105 = vector.shape_cast %104 : vector<1x1x5x32xf32> to vector<5x32xf32>
      %c480 = arith.constant 480 : index
      %c0_80 = arith.constant 0 : index
      %106 = vector.load %arg3[%c480, %c0_80] : memref<514x32xf32, #tpu.memory_space<vmem>>, vector<32x32xf32>
      %cst_81 = arith.constant dense<0.000000e+00> : vector<5x32xf32>
      %107 = tpu.matmul %105, %106, %cst_81 {dimension_numbers = #tpu.dot_dimension_numbers<[1], [0], [0], [1], [0, 0, 1, 1], [], []>} : vector<5x32xf32>, vector<32x32xf32>, vector<5x32xf32> -> vector<5x32xf32>
      %108 = arith.addf %102, %107 : vector<5x32xf32>
      %109 = vector.broadcast %1 : vector<1x32xf32> to vector<5x32xf32>
      %110 = arith.mulf %108, %109 : vector<5x32xf32>
      %111 = vector.broadcast %2 : vector<1x32xf32> to vector<5x32xf32>
      %112 = arith.addf %110, %111 : vector<5x32xf32>
      %c0_82 = arith.constant 0 : index
      %113 = arith.index_cast %arg5 : i32 to index
      %c0_83 = arith.constant 0 : index
      %c0_84 = arith.constant 0 : index
      %114 = vector.load %arg4[%c0_82, %113, %c0_83, %c0_84] : memref<1x5x5x32xf32, #tpu.memory_space<vmem>>, vector<1x1x5x32xf32>
      %115 = vector.shape_cast %114 : vector<1x1x5x32xf32> to vector<5x32xf32>
      %116 = vector.shape_cast %112 : vector<5x32xf32> to vector<1x1x5x32xf32>
      tpu.vector_store %arg4[%c0_82, %113, %c0_83, %c0_84], %116 {strides = array<i32>} : memref<1x5x5x32xf32, #tpu.memory_space<vmem>>, vector<1x1x5x32xf32>,
    }
    %c5_i32_2 = arith.constant 5 : i32
    return
  }
  func.func @transform_0(%arg0: i32, %arg1: i32) -> (i32, i32, i32, i32) {
    %c0_i32 = arith.constant 0 : i32
    %c0_i32_0 = arith.constant 0 : i32
    %c0_i32_1 = arith.constant 0 : i32
    %c0_i32_2 = arith.constant 0 : i32
    return %arg0, %c0_i32, %c0_i32_0, %c0_i32_1 : i32, i32, i32, i32
  }
  func.func @transform_1(%arg0: i32, %arg1: i32) -> (i32, i32) {
    %c0_i32 = arith.constant 0 : i32
    %c0_i32_0 = arith.constant 0 : i32
    %c0_i32_1 = arith.constant 0 : i32
    return %c0_i32, %c0_i32_0 : i32, i32
  }
  func.func @transform_2(%arg0: i32, %arg1: i32) -> (i32, i32, i32, i32) {
    %c0_i32 = arith.constant 0 : i32
    %c0_i32_0 = arith.constant 0 : i32
    %c0_i32_1 = arith.constant 0 : i32
    return %arg0, %arg1, %c0_i32, %c0_i32_0 : i32, i32, i32, i32
  }
}

</mosaic_0001>

<bundles_post_ra>
// kernel: tpu_custom_call.1
= control target key start
LH: loop header
LB: loop body
LE: loop exit
PB: predicated region body
PF: predicated region fallthrough
CT: control target
= control target key end

     0   :  { %s1957_s9 = smov 0   ;;  %s1959_s10 = smov 0   ;;  %s2340_s0 = inlined_call_operand.vmem [shape: f32[2,11,11,32], index: 0, kind: input, shape index: {}]   ;;  %s2341_s1 = inlined_call_operand.vmem [shape: f32[514,32], index: 1, kind: input, shape index: {}]   ;;  %s2342_s2 = inlined_call_operand.vmem [shape: f32[2,5,5,32], index: 2, kind: output, shape index: {}]  }
   0x1   :  { %s1961_s11 = smov 0  }
   0x2 LB: > { %s24_s12 = sadd.s32 1, %s1930_s10  ;;  %p1576_p0 = scmp.ge.s32.totalorder %s1934_s11, 1  ;;  %s1934_s11 = sphi %s1961_s11, %s12_s11   ;;  %s1930_s10 = sphi %s1959_s10, %s2344_s10   ;;  %s1926_s9 = sphi %s1957_s9, %s2343_s9  }
   0x3   : > { %p26_p1 = scmp.ge.s32.totalorder %s24_s12, 2  ;;  %p126_p2 = scmp.lt.s32.totalorder %s1934_s11, 3 }
   0x5   : > { %s2346_s12 = smov (%p26_p1, %s24_s12), 0  ;;  %p127_p3 = pnand %p1576_p0, %p126_p2 }
   0x6   : > { %p152_p4 = scmp.lt.s32.totalorder (!%p127_p3), %s1926_s9, 1  ;;  %s1995_s25 = smov (!%p127_p3), 0  }
   0x7   : > { %130 = sbr.rel (%p127_p3) target bundleno = 299 (0x12b), region = 28 }
   0xc   : > { %v1978_v0 = vld [vmem:[%s2341_s1 + $0x200] ss:$0 sm:$0xff]  ;;  %v1983_v1 = vld [vmem:[%s2341_s1 + $0x201] ss:$0 sm:$0xff]  ;;  %s2348_s9 = smov (!%p152_p4, %s1926_s9), 1 }
   0xd   : > { %s1872_s17 = smul.u32 176, %s2348_s9 }
   0xe   : > { %s1873_s18 = smul.u32 40, %s2348_s9 }
   0xf   : > { %s1988_s21 = scalar_lea.vmem %s2340_s0, %s1872_s17 }
  0x10   : > { %s1993_s24 = scalar_lea.vmem %s2342_s2, %s1873_s18 }
  0x11 LB: >> { %v188_v2 = vld [vmem:[%s2341_s1 + $0x38] sm:$0xff]  ;;  %v1940_v4 = vmov 0.0   ;;  %v187_v5 = vld [vmem:[%s2341_s1 + $0x30] sm:$0xff]  ;;  %s1579_s6 = sshll.u32 %s1938_s25, 4  ;;  %v186_v7 = vld [vmem:[%s2341_s1 + $0x28] sm:$0xff]  ;;  %vm189_vm0 = vcmask 261120   ;;  %s1938_s25 = sphi %s1995_s25, %s175_s25  }
  0x12   : >> { %v183_v3 = vld [vmem:[%s2341_s1 + $0x18] sm:$0xff]  ;;  %1696 = vmatprep.subr.mxu0 %v1940_v4  ;;  %1707 = vmatprep.subr.mxu1 %v1940_v4  ;;  %v182_v6 = vld [vmem:[%s2341_s1 + $0x10] sm:$0xff]  ;;  %v181_v8 = vld [vmem:[%s2341_s1 + $0x8] sm:$0xff]  ;;  %s2024_s14 = scalar_lea.vmem %s1988_s21, %s1579_s6  ;;  %vm1941_vm1 = vmmov 0   ;;  %vm1463_vm2 = vcmask 258048  }
  0x13   : >> { %1697 = vmatpush3.msra.mxu0 %v188_v2  ;;  %1708 = vmatpush3.msra.mxu1 %v183_v3  ;;  %v185_v9 = vld [vmem:[%s2341_s1 + $0x20] sm:$0xff]  ;;  %v340_v13 = vld [vmem:[%s2341_s1 + $0x58] sm:$0xff]  ;;  %v339_v15 = vld [vmem:[%s2341_s1 + $0x50] sm:$0xff] }
  0x14   : >> { %1698 = vmatprep.subr.mxu0 %v1940_v4  ;;  %1709 = vmatprep.subr.mxu1 %v1940_v4  ;;  %v180_v10 = vld [vmem:[%s2341_s1] sm:$0xff]  ;;  %v419_v14 = vld [vmem:[%s2341_s1 + $0x78] sm:$0xff]  ;;  %v418_v16 = vld [vmem:[%s2341_s1 + $0x70] sm:$0xff] }
  0x15   : >> { %1699 = vmatpush3.msra.mxu0 %v187_v5  ;;  %1710 = vmatpush3.msra.mxu1 %v182_v6  ;;  %v184_v11 = vld [vmem:[%s2024_s14 + $0x2] sm:$0x1f]  ;;  %v338_v17 = vld [vmem:[%s2341_s1 + $0x48] sm:$0xff]  ;;  %v501_v23 = vld [vmem:[%s2341_s1 + $0x98] sm:$0xff] }
  0x16   : >> { %1700 = vmatprep.subr.mxu0 %v1940_v4  ;;  %1711 = vmatprep.subr.mxu1 %v1940_v4  ;;  %v179_v12 = vld [vmem:[%s2024_s14] sm:$0x1f]  ;;  %v417_v18 = vld [vmem:[%s2341_s1 + $0x68] sm:$0xff]  ;;  %v580_v24 = vld [vmem:[%s2341_s1 + $0xb8] sm:$0xff] }
  0x17   : >> { %1701 = vmatpush3.msra.mxu0 %v186_v7  ;;  %1712 = vmatpush3.msra.mxu1 %v181_v8  ;;  %v337_v19 = vld [vmem:[%s2341_s1 + $0x40] sm:$0xff]  ;;  %v500_v25 = vld [vmem:[%s2341_s1 + $0x90] sm:$0xff]  ;;  %v499_v27 = vld [vmem:[%s2341_s1 + $0x88] sm:$0xff] }
  0x18   : >> { %1702 = vmatprep.subr.mxu0 %v1940_v4  ;;  %1713 = vmatprep.subr.mxu1 %v1940_v4  ;;  %v416_v20 = vld [vmem:[%s2341_s1 + $0x60] sm:$0xff]  ;;  %v579_v26 = vld [vmem:[%s2341_s1 + $0xb0] sm:$0xff]  ;;  %v578_v28 = vld [vmem:[%s2341_s1 + $0xa8] sm:$0xff] }
  0x19   : >> { %1703 = vmatpush3.msra.mxu0 %v185_v9  ;;  %1704 = vmatprep.mubr.msk.f32.mxu0 %vm1941_vm1, %v1940_v4  ;;  %v336_v21 = vld [vmem:[%s2024_s14 + $0x4] sm:$0x1f]  ;;  %v659_v33 = vld [vmem:[%s2341_s1 + $0xd8] sm:$0xff]  ;;  %v658_v35 = vld [vmem:[%s2341_s1 + $0xd0] sm:$0xff] }
  0x1a   : >> { %1714 = vmatpush3.msra.mxu1 %v180_v10  ;;  %1705 = vmatmul.mubr.msk.f32.vlgmr.msra.gmra.mxu0 %vm189_vm0, %v184_v11  ;;  %v415_v22 = vld [vmem:[%s2024_s14 + $0x6] sm:$0x1f]  ;;  %v1585_v31 = vld [vmem:[%s2024_s14 + $0x20] sm:$0x1f]  ;;  %v738_v34 = vld [vmem:[%s2341_s1 + $0xf8] sm:$0xff] }
  0x1b   : >> { %1715 = vmatprep.mubr.msk.f32.mxu1 %vm1941_vm1, %v1940_v4  ;;  %1718 = vmatprep.subr.mxu0 %v1940_v4  ;;  %v498_v29 = vld [vmem:[%s2341_s1 + $0x80] sm:$0xff]  ;;  %v737_v36 = vld [vmem:[%s2341_s1 + $0xf0] sm:$0xff]  ;;  %v657_v37 = vld [vmem:[%s2341_s1 + $0xc8] sm:$0xff] }
  0x1c   : >> { %1729 = vmatprep.subr.mxu1 %v1940_v4  ;;  %1716 = vmatmul.mubr.msk.f32.vlgmr.msra.gmra.mxu1 %vm189_vm0, %v179_v12  ;;  %v577_v30 = vld [vmem:[%s2341_s1 + $0xa0] sm:$0xff]  ;;  %v736_v38 = vld [vmem:[%s2341_s1 + $0xe8] sm:$0xff]  ;;  %v820_v43 = vld [vmem:[%s2341_s1 + $0x118] sm:$0xff] }
  0x1d   : >> { %1719 = vmatpush3.msra.mxu0 %v340_v13  ;;  %1730 = vmatpush3.msra.mxu1 %v419_v14  ;;  %v1587_v32 = vld [vmem:[%s2024_s14 + $0x22] sm:$0x1f]  ;;  %v899_v44 = vld [vmem:[%s2341_s1 + $0x138] sm:$0xff]  ;;  %v819_v45 = vld [vmem:[%s2341_s1 + $0x110] sm:$0xff] }
  0x1e   : >> { %1720 = vmatprep.subr.mxu0 %v1940_v4  ;;  %1731 = vmatprep.subr.mxu1 %v1940_v4  ;;  %v656_v39 = vld [vmem:[%s2341_s1 + $0xc0] sm:$0xff]  ;;  %v898_v46 = vld [vmem:[%s2341_s1 + $0x130] sm:$0xff]  ;;  %v818_v47 = vld [vmem:[%s2341_s1 + $0x108] sm:$0xff] }
  0x1f   : >> { %1721 = vmatpush3.msra.mxu0 %v339_v15  ;;  %1732 = vmatpush3.msra.mxu1 %v418_v16  ;;  %v735_v40 = vld [vmem:[%s2341_s1 + $0xe0] sm:$0xff]  ;;  %v897_v48 = vld [vmem:[%s2341_s1 + $0x128] sm:$0xff]  ;;  %v978_v53 = vld [vmem:[%s2341_s1 + $0x158] sm:$0xff] }
  0x20   : >> { %1722 = vmatprep.subr.mxu0 %v1940_v4  ;;  %1733 = vmatprep.subr.mxu1 %v1940_v4  ;;  %v1589_v41 = vld [vmem:[%s2024_s14 + $0x24] sm:$0x1f]  ;;  %v1057_v54 = vld [vmem:[%s2341_s1 + $0x178] sm:$0xff]  ;;  %v977_v55 = vld [vmem:[%s2341_s1 + $0x150] sm:$0xff] }
  0x21   : >> { %1723 = vmatpush3.msra.mxu0 %v338_v17  ;;  %1734 = vmatpush3.msra.mxu1 %v417_v18  ;;  %v1591_v42 = vld [vmem:[%s2024_s14 + $0x26] sm:$0x1f]  ;;  %v1594_v51 = vld [vmem:[%s2024_s14 + $0x40] sm:$0x1f]  ;;  %v1056_v56 = vld [vmem:[%s2341_s1 + $0x170] sm:$0xff] }
  0x22   : >> { %1724 = vmatprep.subr.mxu0 %v1940_v4  ;;  %1735 = vmatprep.subr.mxu1 %v1940_v4  ;;  %v817_v49 = vld [vmem:[%s2341_s1 + $0x100] sm:$0xff]  ;;  %v976_v57 = vld [vmem:[%s2341_s1 + $0x148] sm:$0xff]  ;;  %v1139_v63 = vld [vmem:[%s2341_s1 + $0x198] sm:$0xff] }
  0x23   : >> { %1725 = vmatpush3.msra.mxu0 %v337_v19  ;;  %1726 = vmatprep.mubr.msk.f32.mxu0 %vm1941_vm1, %v1940_v4  ;;  %v896_v50 = vld [vmem:[%s2341_s1 + $0x120] sm:$0xff]  ;;  %v1055_v58 = vld [vmem:[%s2341_s1 + $0x168] sm:$0xff]  ;;  %v1218_v2 = vld [vmem:[%s2341_s1 + $0x1b8] sm:$0xff] }
  0x24   : >> { %1736 = vmatpush3.msra.mxu1 %v416_v20  ;;  %1727 = vmatmul.mubr.msk.f32.vlgmr.msra.gmra.mxu0 %vm189_vm0, %v336_v21  ;;  %v1596_v52 = vld [vmem:[%s2024_s14 + $0x42] sm:$0x1f]  ;;  %v1138_v3 = vld [vmem:[%s2341_s1 + $0x190] sm:$0xff]  ;;  %v1137_v6 = vld [vmem:[%s2341_s1 + $0x188] sm:$0xff] }
  0x25   : >> { %1737 = vmatprep.mubr.msk.f32.mxu1 %vm1941_vm1, %v1940_v4  ;;  %1740 = vmatprep.subr.mxu0 %v1940_v4  ;;  %v975_v59 = vld [vmem:[%s2341_s1 + $0x140] sm:$0xff]  ;;  %v1217_v5 = vld [vmem:[%s2341_s1 + $0x1b0] sm:$0xff]  ;;  %v1216_v7 = vld [vmem:[%s2341_s1 + $0x1a8] sm:$0xff] }
  0x26   : >> { %1751 = vmatprep.subr.mxu1 %v1940_v4  ;;  %1738 = vmatmul.mubr.msk.f32.vlgmr.msra.gmra.mxu1 %vm189_vm0, %v415_v22  ;;  %v1054_v60 = vld [vmem:[%s2341_s1 + $0x160] sm:$0xff]  ;;  %v1297_v12 = vld [vmem:[%s2341_s1 + $0x1d8] sm:$0xff]  ;;  %v1296_v14 = vld [vmem:[%s2341_s1 + $0x1d0] sm:$0xff] }
  0x27   : >> { %1741 = vmatpush3.msra.mxu0 %v501_v23  ;;  %1752 = vmatpush3.msra.mxu1 %v580_v24  ;;  %v1598_v61 = vld [vmem:[%s2024_s14 + $0x44] sm:$0x1f]  ;;  %v1376_v13 = vld [vmem:[%s2341_s1 + $0x1f8] sm:$0xff]  ;;  %v1375_v15 = vld [vmem:[%s2341_s1 + $0x1f0] sm:$0xff] }
  0x28   : >> { %1742 = vmatprep.subr.mxu0 %v1940_v4  ;;  %1753 = vmatprep.subr.mxu1 %v1940_v4  ;;  %v1600_v62 = vld [vmem:[%s2024_s14 + $0x46] sm:$0x1f]  ;;  %v1603_v10 = vld [vmem:[%s2024_s14 + $0x60] sm:$0x1f] }
  0x29   : >> { %1743 = vmatpush3.msra.mxu0 %v500_v25  ;;  %1754 = vmatpush3.msra.mxu1 %v579_v26  ;;  %v1136_v8 = vld [vmem:[%s2341_s1 + $0x180] sm:$0xff]  ;;  %v1295_v16 = vld [vmem:[%s2341_s1 + $0x1c8] sm:$0xff] }
  0x2a   : >> { %1744 = vmatprep.subr.mxu0 %v1940_v4  ;;  %1755 = vmatprep.subr.mxu1 %v1940_v4  ;;  %v1215_v9 = vld [vmem:[%s2341_s1 + $0x1a0] sm:$0xff]  ;;  %v1374_v17 = vld [vmem:[%s2341_s1 + $0x1e8] sm:$0xff] }
  0x2b   : >> { %1745 = vmatpush3.msra.mxu0 %v499_v27  ;;  %1756 = vmatpush3.msra.mxu1 %v578_v28  ;;  %v1605_v11 = vld [vmem:[%s2024_s14 + $0x62] sm:$0x1f] }
  0x2c   : >> { %1746 = vmatprep.subr.mxu0 %v1940_v4  ;;  %1757 = vmatprep.subr.mxu1 %v1940_v4  ;;  %v1294_v18 = vld [vmem:[%s2341_s1 + $0x1c0] sm:$0xff] }
  0x2d   : >> { %1747 = vmatpush3.msra.mxu0 %v498_v29  ;;  %1748 = vmatprep.mubr.msk.f32.mxu0 %vm1941_vm1, %v1940_v4  ;;  %v1373_v19 = vld [vmem:[%s2341_s1 + $0x1e0] sm:$0xff] }
  0x2e   : >> { %1758 = vmatpush3.msra.mxu1 %v577_v30  ;;  %1749 = vmatmul.mubr.msk.f32.vlgmr.msra.gmra.mxu0 %vm189_vm0, %v1585_v31  ;;  %v1607_v20 = vld [vmem:[%s2024_s14 + $0x64] sm:$0x1f] }
  0x2f   : >> { %1759 = vmatprep.mubr.msk.f32.mxu1 %vm1941_vm1, %v1940_v4  ;;  %1762 = vmatprep.subr.mxu0 %v1940_v4  ;;  %v1609_v21 = vld [vmem:[%s2024_s14 + $0x66] sm:$0x1f]  ;;  %s1613_s14 = sshll.u32 %s1938_s25, 3  ;;  %s175_s25 = sadd.s32 1, %s1938_s25  }
  0x30   : >> { %1773 = vmatprep.subr.mxu1 %v1940_v4  ;;  %1760 = vmatmul.mubr.msk.f32.vlgmr.msra.gmra.mxu1 %vm189_vm0, %v1587_v32  ;;  %s1462_s29 = scalar_lea.vmem %s1993_s24, %s1613_s14  ;;  %p172_p5 = scmp.ge.s32.totalorder %s175_s25, 5  }
  0x31   : >> { %1763 = vmatpush3.msra.mxu0 %v659_v33  ;;  %1774 = vmatpush3.msra.mxu1 %v738_v34 }
  0x32   : >> { %1764 = vmatprep.subr.mxu0 %v1940_v4  ;;  %1775 = vmatprep.subr.mxu1 %v1940_v4 }
  0x33   : >> { %1765 = vmatpush3.msra.mxu0 %v658_v35  ;;  %1776 = vmatpush3.msra.mxu1 %v737_v36 }
  0x34   : >> { %1766 = vmatprep.subr.mxu0 %v1940_v4  ;;  %1777 = vmatprep.subr.mxu1 %v1940_v4 }
  0x35   : >> { %1767 = vmatpush3.msra.mxu0 %v657_v37  ;;  %1778 = vmatpush3.msra.mxu1 %v736_v38 }
  0x36   : >> { %1768 = vmatprep.subr.mxu0 %v1940_v4  ;;  %1779 = vmatprep.subr.mxu1 %v1940_v4 }
  0x37   : >> { %1769 = vmatpush3.msra.mxu0 %v656_v39  ;;  %1770 = vmatprep.mubr.msk.f32.mxu0 %vm1941_vm1, %v1940_v4 }
  0x38   : >> { %1780 = vmatpush3.msra.mxu1 %v735_v40  ;;  %1771 = vmatmul.mubr.msk.f32.vlgmr.msra.gmra.mxu0 %vm189_vm0, %v1589_v41 }
  0x39   : >> { %1781 = vmatprep.mubr.msk.f32.mxu1 %vm1941_vm1, %v1940_v4  ;;  %1784 = vmatprep.subr.mxu0 %v1940_v4 }
  0x3a   : >> { %1795 = vmatprep.subr.mxu1 %v1940_v4  ;;  %1782 = vmatmul.mubr.msk.f32.vlgmr.msra.gmra.mxu1 %vm189_vm0, %v1591_v42 }
  0x3b   : >> { %1785 = vmatpush3.msra.mxu0 %v820_v43  ;;  %1796 = vmatpush3.msra.mxu1 %v899_v44 }
  0x3c   : >> { %1786 = vmatprep.subr.mxu0 %v1940_v4  ;;  %1797 = vmatprep.subr.mxu1 %v1940_v4 }
  0x3d   : >> { %1787 = vmatpush3.msra.mxu0 %v819_v45  ;;  %1798 = vmatpush3.msra.mxu1 %v898_v46 }
  0x3e   : >> { %1788 = vmatprep.subr.mxu0 %v1940_v4  ;;  %1799 = vmatprep.subr.mxu1 %v1940_v4 }
  0x3f   : >> { %1789 = vmatpush3.msra.mxu0 %v818_v47  ;;  %1800 = vmatpush3.msra.mxu1 %v897_v48 }
  0x40   : >> { %1790 = vmatprep.subr.mxu0 %v1940_v4  ;;  %1801 = vmatprep.subr.mxu1 %v1940_v4 }
  0x41   : >> { %1791 = vmatpush3.msra.mxu0 %v817_v49  ;;  %1792 = vmatprep.mubr.msk.f32.mxu0 %vm1941_vm1, %v1940_v4 }
  0x42   : >> { %1802 = vmatpush3.msra.mxu1 %v896_v50  ;;  %1793 = vmatmul.mubr.msk.f32.vlgmr.msra.gmra.mxu0 %vm189_vm0, %v1594_v51 }
  0x43   : >> { %1803 = vmatprep.mubr.msk.f32.mxu1 %vm1941_vm1, %v1940_v4  ;;  %1806 = vmatprep.subr.mxu0 %v1940_v4 }
  0x44   : >> { %1817 = vmatprep.subr.mxu1 %v1940_v4  ;;  %1804 = vmatmul.mubr.msk.f32.vlgmr.msra.gmra.mxu1 %vm189_vm0, %v1596_v52 }
  0x45   : >> { %1807 = vmatpush3.msra.mxu0 %v978_v53  ;;  %1818 = vmatpush3.msra.mxu1 %v1057_v54 }
  0x46   : >> { %1808 = vmatprep.subr.mxu0 %v1940_v4  ;;  %1819 = vmatprep.subr.mxu1 %v1940_v4 }
  0x47   : >> { %1809 = vmatpush3.msra.mxu0 %v977_v55  ;;  %1820 = vmatpush3.msra.mxu1 %v1056_v56 }
  0x48   : >> { %1810 = vmatprep.subr.mxu0 %v1940_v4  ;;  %1821 = vmatprep.subr.mxu1 %v1940_v4 }
  0x49   : >> { %1811 = vmatpush3.msra.mxu0 %v976_v57  ;;  %1822 = vmatpush3.msra.mxu1 %v1055_v58 }
  0x4a   : >> { %1812 = vmatprep.subr.mxu0 %v1940_v4  ;;  %1823 = vmatprep.subr.mxu1 %v1940_v4 }
  0x4b   : >> { %1813 = vmatpush3.msra.mxu0 %v975_v59  ;;  %1814 = vmatprep.mubr.msk.f32.mxu0 %vm1941_vm1, %v1940_v4 }
  0x4c   : >> { %1824 = vmatpush3.msra.mxu1 %v1054_v60  ;;  %1815 = vmatmul.mubr.msk.f32.vlgmr.msra.gmra.mxu0 %vm189_vm0, %v1598_v61 }
  0x4d   : >> { %1825 = vmatprep.mubr.msk.f32.mxu1 %vm1941_vm1, %v1940_v4  ;;  %1828 = vmatprep.subr.mxu0 %v1940_v4 }
  0x4e   : >> { %1839 = vmatprep.subr.mxu1 %v1940_v4  ;;  %1826 = vmatmul.mubr.msk.f32.vlgmr.msra.gmra.mxu1 %vm189_vm0, %v1600_v62 }
  0x4f   : >> { %1829 = vmatpush3.msra.mxu0 %v1139_v63  ;;  %1840 = vmatpush3.msra.mxu1 %v1218_v2 }
  0x50   : >> { %1830 = vmatprep.subr.mxu0 %v1940_v4  ;;  %1841 = vmatprep.subr.mxu1 %v1940_v4 }
  0x51   : >> { %1831 = vmatpush3.msra.mxu0 %v1138_v3  ;;  %1842 = vmatpush3.msra.mxu1 %v1217_v5 }
  0x52   : >> { %1832 = vmatprep.subr.mxu0 %v1940_v4  ;;  %1843 = vmatprep.subr.mxu1 %v1940_v4 }
  0x53   : >> { %1833 = vmatpush3.msra.mxu0 %v1137_v6  ;;  %1844 = vmatpush3.msra.mxu1 %v1216_v7 }
  0x54   : >> { %1834 = vmatprep.subr.mxu0 %v1940_v4  ;;  %1845 = vmatprep.subr.mxu1 %v1940_v4 }
  0x55   : >> { %1835 = vmatpush3.msra.mxu0 %v1136_v8  ;;  %1836 = vmatprep.mubr.msk.f32.mxu0 %vm1941_vm1, %v1940_v4 }
  0x56   : >> { %1846 = vmatpush3.msra.mxu1 %v1215_v9  ;;  %1837 = vmatmul.mubr.msk.f32.vlgmr.msra.gmra.mxu0 %vm189_vm0, %v1603_v10 }
  0x57   : >> { %1847 = vmatprep.mubr.msk.f32.mxu1 %vm1941_vm1, %v1940_v4  ;;  %1850 = vmatprep.subr.mxu0 %v1940_v4 }
  0x58   : >> { %1861 = vmatprep.subr.mxu1 %v1940_v4  ;;  %1848 = vmatmul.mubr.msk.f32.vlgmr.msra.gmra.mxu1 %vm189_vm0, %v1605_v11 }
  0x59   : >> { %1851 = vmatpush3.msra.mxu0 %v1297_v12  ;;  %1862 = vmatpush3.msra.mxu1 %v1376_v13 }
  0x5a   : >> { %1852 = vmatprep.subr.mxu0 %v1940_v4  ;;  %1863 = vmatprep.subr.mxu1 %v1940_v4 }
  0x5b   : >> { %1853 = vmatpush3.msra.mxu0 %v1296_v14  ;;  %1864 = vmatpush3.msra.mxu1 %v1375_v15 }
  0x5c   : >> { %1854 = vmatprep.subr.mxu0 %v1940_v4  ;;  %1865 = vmatprep.subr.mxu1 %v1940_v4 }
  0x5d   : >> { %1855 = vmatpush3.msra.mxu0 %v1295_v16  ;;  %1866 = vmatpush3.msra.mxu1 %v1374_v17 }
  0x5e   : >> { %1856 = vmatprep.subr.mxu0 %v1940_v4  ;;  %1867 = vmatprep.subr.mxu1 %v1940_v4 }
  0x5f   : >> { %1857 = vmatpush3.msra.mxu0 %v1294_v18  ;;  %1858 = vmatprep.mubr.msk.f32.mxu0 %vm1941_vm1, %v1940_v4 }
  0x60   : >> { %1868 = vmatpush3.msra.mxu1 %v1373_v19  ;;  %1869 = vmatprep.mubr.msk.f32.mxu1 %vm1941_vm1, %v1940_v4 }
  0x61   : >> { %1859 = vmatmul.mubr.msk.f32.vlgmr.msra.gmra.mxu0 %vm189_vm0, %v1607_v20  ;;  %1870 = vmatmul.mubr.msk.f32.vlgmr.msra.gmra.mxu1 %vm189_vm0, %v1609_v21 }
  0xda   : >> { %v259_v22 = vpop.f32.mrf.mxu0 }
  0xdc   : >> { %v332_v23 = vpop.f32.mrf.mxu1  ;;  %v1706_v24 = vpop.f32.mrf.mxu0 }
  0xdd   : >> { %v333_v4 = vadd.f32 %v332_v23, %v259_v22 }
  0xde   : >> { %v1717_v25 = vpop.f32.mrf.mxu1 }
  0xe4   : >> { %v410_v26 = vpop.f32.mrf.mxu0 }
  0xe5   : >> { %v414_v38 = vadd.f32 %v410_v26, %v333_v4 }
  0xe6   : >> { %v489_v27 = vpop.f32.mrf.mxu1  ;;  %v1728_v28 = vpop.f32.mrf.mxu0 }
  0xe7   : >> { %v493_v39 = vadd.f32 %v489_v27, %v414_v38 }
  0xe8   : >> { %v1739_v29 = vpop.f32.mrf.mxu1 }
  0xee   : >> { %v571_v30 = vpop.f32.mrf.mxu0 }
  0xef   : >> { %v575_v41 = vadd.f32 %v571_v30, %v493_v39 }
  0xf0   : >> { %v650_v31 = vpop.f32.mrf.mxu1  ;;  %v1750_v32 = vpop.f32.mrf.mxu0 }
  0xf1   : >> { %v654_v45 = vadd.f32 %v650_v31, %v575_v41 }
  0xf2   : >> { %v1761_v33 = vpop.f32.mrf.mxu1 }
  0xf8   : >> { %v729_v34 = vpop.f32.mrf.mxu0 }
  0xf9   : >> { %v733_v46 = vadd.f32 %v729_v34, %v654_v45 }
  0xfa   : >> { %v808_v35 = vpop.f32.mrf.mxu1  ;;  %v1772_v36 = vpop.f32.mrf.mxu0 }
  0xfb   : >> { %v812_v48 = vadd.f32 %v808_v35, %v733_v46 }
  0xfc   : >> { %v1783_v37 = vpop.f32.mrf.mxu1 }
 0x102   : >> { %v890_v40 = vpop.f32.mrf.mxu0 }
 0x103   : >> { %v894_v51 = vadd.f32 %v890_v40, %v812_v48 }
 0x104   : >> { %v969_v42 = vpop.f32.mrf.mxu1  ;;  %v1794_v43 = vpop.f32.mrf.mxu0 }
 0x105   : >> { %v973_v53 = vadd.f32 %v969_v42, %v894_v51 }
 0x106   : >> { %v1805_v44 = vpop.f32.mrf.mxu1 }
 0x10c   : >> { %v1048_v47 = vpop.f32.mrf.mxu0 }
 0x10d   : >> { %v1052_v54 = vadd.f32 %v1048_v47, %v973_v53 }
 0x10e   : >> { %v1127_v49 = vpop.f32.mrf.mxu1  ;;  %v1816_v50 = vpop.f32.mrf.mxu0 }
 0x10f   : >> { %v1131_v58 = vadd.f32 %v1127_v49, %v1052_v54 }
 0x110   : >> { %v1827_v52 = vpop.f32.mrf.mxu1 }
 0x116   : >> { %v1209_v55 = vpop.f32.mrf.mxu0 }
 0x117   : >> { %v1213_v60 = vadd.f32 %v1209_v55, %v1131_v58 }
 0x118   : >> { %v1288_v56 = vpop.f32.mrf.mxu1  ;;  %v1838_v57 = vpop.f32.mrf.mxu0 }
 0x119   : >> { %v1292_v61 = vadd.f32 %v1288_v56, %v1213_v60 }
 0x11a   : >> { %v1849_v59 = vpop.f32.mrf.mxu1 }
 0x121   : >> { %v1367_v62 = vpop.f32.mrf.mxu0  ;;  %v1446_v63 = vpop.f32.mrf.mxu1 }
 0x122   : >> { %v1371_v2 = vadd.f32 %v1367_v62, %v1292_v61 }
 0x123   : >> { %v1860_v3 = vpop.f32.mrf.mxu0  ;;  %v1871_v5 = vpop.f32.mrf.mxu1 }
 0x124   : >> { %v1450_v6 = vadd.f32 %v1446_v63, %v1371_v2 }
 0x126   : >> { %v1455_v7 = vmul.f32 %v1978_v0, %v1450_v6  ;;  %174 = sbr.rel (!%p172_p5) target bundleno = 17 (0x11), region = 70 }
 0x128   : >> { %v1460_v8 = vadd.f32 %v1983_v1, %v1455_v7 }
 0x12a   : >> { %1464 = vst.msk [vmem:[%s1462_s29] sm:$0x1f] %vm1463_vm2, %v1460_v8 }
 0x12b PF: > { %s12_s11 = sadd.s32 1, %s1934_s11   ;;  %s2343_s9 = smov %s1930_s10 }
 0x12c   : > { %p9_p6 = scmp.ge.s32.totalorder %s12_s11, 4   ;;  %s2344_s10 = smov %s2346_s12 }
 0x12e   :  { %11 = sbr.rel (!%p9_p6) target bundleno = 2 (0x2), region = 81 }

</bundles_post_ra>
